<compile_context>
chip_gen: v7x
topology: tpu7x:2x2x1
jax: 0.10.0
libtpu: 0.0.40
codegen_flags: <defaults>
</compile_context>

<pallas_src>
import jax
import jax.numpy as jnp
from jax import lax
from jax.experimental import pallas as pl
from jax.experimental.pallas import tpu as pltpu


# ---------------------------------------------------------------------------
# Pallas kernels
# ---------------------------------------------------------------------------
def _conv_bias_kernel(w_ref, b_ref, r_ref, o_ref):
    # Standalone ComplexWrapper path: one MXU matmul per M-tile, f32 accumulate,
    # per-row bias add.
    o_ref[...] = (jnp.dot(w_ref[...], r_ref[...],
                          preferred_element_type=jnp.float32)
                  + b_ref[...]).astype(o_ref.dtype)


def _conv_stats_kernel(w_ref, r_ref, o_ref, psum_ref, pssq_ref):
    # Decoder path: conv matmul + fused BatchNorm pass-1 statistics.
    # Per-tile partial sum / sum-of-squares of the f32 accumulator are emitted as
    # lane-broadcast (1, RO, 128) blocks; the host picks lane 0 and reduces over the
    # tiny (nt, RO) partials.  Keeps the grid fully "parallel" (dual-TC on v7x).
    acc = jnp.dot(w_ref[...], r_ref[...], preferred_element_type=jnp.float32)
    o_ref[...] = acc.astype(o_ref.dtype)
    s = jnp.sum(acc, axis=1, keepdims=True)           # (RO, 1)
    q = jnp.sum(acc * acc, axis=1, keepdims=True)     # (RO, 1)
    lanes = psum_ref.shape[-1]
    psum_ref[0] = jnp.broadcast_to(s, (s.shape[0], lanes))
    pssq_ref[0] = jnp.broadcast_to(q, (q.shape[0], lanes))


def _bn_apply_prelu_kernel(x_ref, scale_ref, shift_ref, a_ref, o_ref):
    # BatchNorm affine apply + PReLU (single shared alpha read from SMEM).
    y = x_ref[...].astype(jnp.float32) * scale_ref[...] + shift_ref[...]
    a = a_ref[0]
    o_ref[...] = jnp.where(y > 0, y, a * y).astype(o_ref.dtype)


# ---------------------------------------------------------------------------
# Tiling / VMEM helpers
# ---------------------------------------------------------------------------
def _round_up(v, m):
    return -(-v // m) * m


def _vmem_limit_bytes():
    """Generation-aware scoped-VMEM budget (~1/2 physical, capped at 64 MiB).
    v7x: 64 MiB phys -> 32 MiB; v5e/v6e: 128 MiB phys -> 64 MiB."""
    try:
        phys = int(pltpu.get_tpu_info().vmem_capacity_bytes)
    except Exception:
        phys = 64 * 1024 * 1024          # conservative fallback (safe on all gens)
    return int(min(phys // 2, 64 * 1024 * 1024))


def _clamp_tile(cap, bytes_per_col, budget, frac=0.5):
    """Largest 128-multiple column tile that keeps live buffering under frac*budget."""
    max_cols = (int(budget * frac) // max(1, bytes_per_col) // 128) * 128
    return max(128, min(cap, max(max_cols, 128)))


def _pick_tile_and_pad(total, cap):
    """Pick a lane-dense tile <= cap and the padded total it must divide."""
    cap = max(128, (cap // 128) * 128)
    if total <= cap:
        tm = _round_up(total, 128)
        return tm, tm
    t = cap
    while t >= 128:
        if total % t == 0:
            return t, total
        t -= 128
    return cap, _round_up(total, cap)        # pad M up; padded cols discarded later


def _pick_divisor_tile(total, cap):
    cap = max(128, (cap // 128) * 128)
    if total <= cap:
        return total
    t = cap
    while t >= 128:
        if total % t == 0:
            return t
        t -= 128
    return total


# ---------------------------------------------------------------------------
# Polyphase operand construction (host-side JAX)
# ---------------------------------------------------------------------------
def _build_polyphase_operands(x, params, *, kernel_size, stride, padding,
                              output_padding, conv_tile_m, slab_dtype):
    N, Ci2, H, W = x.shape
    KH, KW = kernel_size
    sh, sw = stride
    ph, pw = padding
    oph, opw = output_padding

    Wr, Wi = params["w_real"], params["w_imag"]      # (Ci, Co, KH, KW)
    br, bi = params["b_real"], params["b_imag"]      # (Co,)
    Co = Wr.shape[1]
    Co2 = 2 * Co

    Ho = (H - 1) * sh - 2 * ph + KH + oph
    Wo = (W - 1) * sw - 2 * pw + KW + opw
    # TODO(synk): uniform polyphase assumes Ho % sh == 0 and Wo % sw == 0 (true for
    # DCCRN decoder configs); ragged phases would need per-phase masking.
    assert Ho % sh == 0 and Wo % sw == 0
    Hq, Wq = Ho // sh, Wo // sw
    P = sh * sw

    # ConvTranspose scatter: out[s*q + r] += w[k] * x[q + (r+pad-k)//s], k == r+pad (mod s)
    def taps(r, pad, K, s):
        return [(k, (r + pad - k) // s) for k in range(K) if (k - r - pad) % s == 0]

    phases = [(ry, rx) for ry in range(sh) for rx in range(sw)]
    taps_h = {ry: taps(ry, ph, KH, sh) for ry in range(sh)}
    taps_w = {rx: taps(rx, pw, KW, sw) for rx in range(sw)}
    Dh = sorted({d for t in taps_h.values() for _, d in t})
    Dw = sorted({d for t in taps_w.values() for _, d in t})
    shifts = [(dh, dw) for dh in Dh for dw in Dw]
    shift_idx = {sft: i for i, sft in enumerate(shifts)}
    S = len(shifts)

    # Complex-folded effective weight per tap, stacked over (phase, shift).
    def tap_mat(kh, kw):
        wr = Wr[:, :, kh, kw].T                       # (Co, Ci)
        wi = Wi[:, :, kh, kw].T
        return jnp.concatenate(
            [jnp.concatenate([wr, -wi], axis=1),
             jnp.concatenate([wi, wr], axis=1)], axis=0)        # (Co2, Ci2)

    W4 = jnp.zeros((Co2, P, S, Ci2), jnp.float32)
    for p, (ry, rx) in enumerate(phases):
        for kh, dh in taps_h[ry]:
            for kw, dw in taps_w[rx]:
                W4 = W4.at[:, p, shift_idx[(dh, dw)], :].set(tap_mat(kh, kw))
    RO, K = Co2 * P, S * Ci2
    W_stack = W4.reshape(RO, K).astype(slab_dtype)
    b_eff = jnp.concatenate([br - bi, br + bi])                  # (Co2,)
    b_stack = jnp.repeat(b_eff, P)[:, None].astype(jnp.float32)  # (RO, 1)

    # Shift-im2col slab: transpose the padded input once, then S slice+reshape copies.
    # TODO(synk): a fully fused variant (grid axis over shifts + pl.Element windows)
    # would avoid materializing R (S x input bytes) in HBM entirely.
    pad_t = max(0, -min(Dh)); pad_b = max(0, max(Dh) + Hq - H)
    pad_l = max(0, -min(Dw)); pad_r = max(0, max(Dw) + Wq - W)
    xp = jnp.pad(x, ((0, 0), (0, 0), (pad_t, pad_b), (pad_l, pad_r)))
    xpt = jnp.transpose(xp, (1, 0, 2, 3)).astype(slab_dtype)     # (Ci2, N, Hp, Wp)
    M = N * Hq * Wq

    budget = _vmem_limit_bytes()
    ib = jnp.dtype(slab_dtype).itemsize
    cap = _clamp_tile(conv_tile_m, 2 * (K + RO) * ib, budget)    # dbl-buffered in+out
    TM, Mp = _pick_tile_and_pad(M, cap)

    views = []
    for dh, dw in shifts:
        v = xpt[:, :, pad_t + dh:pad_t + dh + Hq, pad_l + dw:pad_l + dw + Wq]
        views.append(v.reshape(Ci2, M))
    R = jnp.concatenate(views, axis=0)                           # (S*Ci2, M)
    if Mp > M:
        R = jnp.pad(R, ((0, 0), (0, Mp - M)))    # zero cols -> zero conv output cols

    geom = dict(N=N, Co2=Co2, Ho=Ho, Wo=Wo, Hq=Hq, Wq=Wq, P=P, sh=sh, sw=sw,
                M=M, Mp=Mp, RO=RO, K=K, TM=TM, nt=Mp // TM, budget=budget)
    return W_stack, b_stack, R, geom


def _interleave_phases(slab, geom, out_dtype):
    """(Co2, P*Mp) phase-major slab -> NCHW via one reshape/transpose (no strided
    scatter); padded columns are sliced away."""
    N, Co2, Ho, Wo = geom["N"], geom["Co2"], geom["Ho"], geom["Wo"]
    Hq, Wq, sh, sw = geom["Hq"], geom["Wq"], geom["sh"], geom["sw"]
    P, M, Mp = geom["P"], geom["M"], geom["Mp"]
    y = slab.reshape(Co2, P, Mp)[:, :, :M]
    y = y.reshape(Co2, sh, sw, N, Hq, Wq)
    y = jnp.transpose(y, (3, 0, 4, 1, 5, 2))       # (N, Co2, Hq, sh, Wq, sw)
    return y.reshape(N, Co2, Ho, Wo).astype(out_dtype)


# ---------------------------------------------------------------------------
# Public entry points
# ---------------------------------------------------------------------------
def complex_wrapper_forward(x, params, *, kernel_size, stride, padding,
                            output_padding, conv_tile_m=8192):
    """ComplexWrapper(nn.ConvTranspose2d, ...) forward, NCHW in / NCHW out (f32 exact)."""
    W_stack, b_stack, R, g = _build_polyphase_operands(
        x, params, kernel_size=kernel_size, stride=stride, padding=padding,
        output_padding=output_padding, conv_tile_m=conv_tile_m,
        slab_dtype=jnp.float32)
    RO, K, TM, Mp, nt = g["RO"], g["K"], g["TM"], g["Mp"], g["nt"]

    conv = pl.pallas_call(
        _conv_bias_kernel,
        out_shape=jax.ShapeDtypeStruct((RO, Mp), jnp.float32),
        grid_spec=pltpu.PrefetchScalarGridSpec(
            num_scalar_prefetch=0,
            grid=(nt,),
            in_specs=[
                pl.BlockSpec((RO, K), lambda i: (0, 0)),
                pl.BlockSpec((RO, 1), lambda i: (0, 0)),
                pl.BlockSpec((K, TM), lambda i: (0, i)),
            ],
            out_specs=pl.BlockSpec((RO, TM), lambda i: (0, i)),
        ),
        compiler_params=pltpu.CompilerParams(
            dimension_semantics=("parallel",),
            vmem_limit_bytes=g["budget"]),
    )(W_stack, b_stack, R)

    return _interleave_phases(conv.reshape(g["Co2"], g["P"] * Mp), g, x.dtype)


def decoder_block_forward(x, params, *, kernel_size, stride, padding,
                          output_padding, eps=1e-5, conv_tile_m=8192,
                          bn_tile_m=8192, slab_dtype=jnp.float32):
    """ComplexWrapper(ConvTranspose2d) -> BatchNorm2d(batch stats) -> PReLU.
    TODO(synk): BatchNorm running_mean/var buffers are not updated (forward only)."""
    W_stack, _, R, g = _build_polyphase_operands(
        x, params, kernel_size=kernel_size, stride=stride, padding=padding,
        output_padding=output_padding, conv_tile_m=conv_tile_m,
        slab_dtype=slab_dtype)
    RO, K, TM, Mp, nt = g["RO"], g["K"], g["TM"], g["Mp"], g["nt"]
    Co2, P, M = g["Co2"], g["P"], g["M"]
    budget = g["budget"]

    # Conv matmul with fused BN pass-1 stats.  Bias omitted: a per-channel constant is
    # exactly cancelled by the BN mean subtraction (also avoids DC-offset cancellation
    # in the single-pass variance).
    conv, psum, pssq = pl.pallas_call(
        _conv_stats_kernel,
        out_shape=(jax.ShapeDtypeStruct((RO, Mp), slab_dtype),
                   jax.ShapeDtypeStruct((nt, RO, 128), jnp.float32),
                   jax.ShapeDtypeStruct((nt, RO, 128), jnp.float32)),
        grid_spec=pltpu.PrefetchScalarGridSpec(
            num_scalar_prefetch=0,
            grid=(nt,),
            in_specs=[
                pl.BlockSpec((RO, K), lambda i: (0, 0)),
                pl.BlockSpec((K, TM), lambda i: (0, i)),
            ],
            out_specs=[
                pl.BlockSpec((RO, TM), lambda i: (0, i)),
                pl.BlockSpec((1, RO, 128), lambda i: (i, 0, 0)),
                pl.BlockSpec((1, RO, 128), lambda i: (i, 0, 0)),
            ],
        ),
        compiler_params=pltpu.CompilerParams(
            dimension_semantics=("parallel",),
            vmem_limit_bytes=budget),
    )(W_stack, R)

    # Finalize BN statistics (tiny) outside the kernel: take lane 0 of the broadcast
    # partials, reduce over tiles, fold the P output phases into their channel.
    gamma, beta, alpha = params["gamma"], params["beta"], params["alpha"]
    cnt = float(P * M)                                  # padded cols contribute zero
    row_sum = psum[:, :, 0].sum(axis=0)                 # (RO,)
    row_ssq = pssq[:, :, 0].sum(axis=0)
    ch_sum = row_sum.reshape(Co2, P).sum(axis=1)
    ch_ssq = row_ssq.reshape(Co2, P).sum(axis=1)
    mean = ch_sum / cnt
    # TODO(synk): single-pass E[x^2]-mean^2 in f32; a Welford/centered pass would be
    # safer for channels with a huge DC offset (mitigated here by the bias removal).
    var = jnp.maximum(ch_ssq / cnt - mean * mean, 0.0)  # biased variance (torch BN)
    scale = gamma * lax.rsqrt(var + eps)
    shift = beta - mean * scale

    slab = conv.reshape(Co2, P * Mp)                    # free row-major reshape
    Mtot = P * Mp
    ib = jnp.dtype(slab_dtype).itemsize
    TBN = _pick_divisor_tile(Mtot, _clamp_tile(bn_tile_m, 4 * Co2 * ib, budget))

    out_slab = pl.pallas_call(
        _bn_apply_prelu_kernel,
        out_shape=jax.ShapeDtypeStruct((Co2, Mtot), slab_dtype),
        grid_spec=pltpu.PrefetchScalarGridSpec(
            num_scalar_prefetch=0,
            grid=(Mtot // TBN,),
            in_specs=[
                pl.BlockSpec((Co2, TBN), lambda i: (0, i)),
                pl.BlockSpec((Co2, 1), lambda i: (0, 0)),
                pl.BlockSpec((Co2, 1), lambda i: (0, 0)),
                pl.BlockSpec(memory_space=pltpu.MemorySpace.SMEM),
            ],
            out_specs=pl.BlockSpec((Co2, TBN), lambda i: (0, i)),
        ),
        compiler_params=pltpu.CompilerParams(
            dimension_semantics=("parallel",),
            vmem_limit_bytes=budget),
    )(slab, scale[:, None], shift[:, None],
      jnp.asarray(alpha, jnp.float32).reshape(1))

    return _interleave_phases(out_slab, g, x.dtype)


# ---------------------------------------------------------------------------
# Independent pure-JAX references (flip + lhs-dilation formulation)
# ---------------------------------------------------------------------------
def _complex_tconv_reference(x, params, *, kernel_size, stride, padding,
                             output_padding):
    KH, KW = kernel_size
    sh, sw = stride
    ph, pw = padding
    oph, opw = output_padding
    Wr, Wi = params["w_real"], params["w_imag"]
    br, bi = params["b_real"], params["b_imag"]

    def t2c(wt):  # ConvTranspose weight (Ci,Co,KH,KW) -> conv weight, flipped
        return jnp.transpose(wt, (1, 0, 2, 3))[:, :, ::-1, ::-1]

    w_eff = jnp.concatenate(
        [jnp.concatenate([t2c(Wr), -t2c(Wi)], axis=1),
         jnp.concatenate([t2c(Wi), t2c(Wr)], axis=1)], axis=0)
    b_eff = jnp.concatenate([br - bi, br + bi])
    return lax.conv_general_dilated(
        x, w_eff, window_strides=(1, 1),
        padding=((KH - 1 - ph, KH - 1 - ph + oph),
                 (KW - 1 - pw, KW - 1 - pw + opw)),
        lhs_dilation=(sh, sw),
        dimension_numbers=("NCHW", "OIHW", "NCHW"),
    ) + b_eff[None, :, None, None]


def decoder_block_reference(x, params, *, kernel_size, stride, padding,
                            output_padding, eps=1e-5):
    conv = _complex_tconv_reference(
        x, params, kernel_size=kernel_size, stride=stride, padding=padding,
        output_padding=output_padding)
    gamma, beta, alpha = params["gamma"], params["beta"], params["alpha"]
    mean = conv.mean(axis=(0, 2, 3), keepdims=True)
    var = ((conv - mean) ** 2).mean(axis=(0, 2, 3), keepdims=True)
    y = (conv - mean) * lax.rsqrt(var + eps)
    y = y * gamma[None, :, None, None] + beta[None, :, None, None]
    return jnp.where(y > 0, y, alpha * y)


# ---------------------------------------------------------------------------
if __name__ == "__main__":
    # ComplexWrapper(nn.ConvTranspose2d, 4, 4, kernel_size=(3,3), stride=(2,2),
    #                padding=(1,1), output_padding=(1,1))  — DCCRN decoder config.
    Cin, Cout = 4, 4
    kernel_size, stride = (3, 3), (2, 2)
    padding, output_padding = (1, 1), (1, 1)
    cfg = dict(kernel_size=kernel_size, stride=stride, padding=padding,
               output_padding=output_padding)

    key = jax.random.PRNGKey(0)
    ks = jax.random.split(key, 8)
    params = {
        "w_real": 0.1 * jax.random.normal(ks[0], (Cin, Cout, *kernel_size), jnp.float32),
        "w_imag": 0.1 * jax.random.normal(ks[1], (Cin, Cout, *kernel_size), jnp.float32),
        "b_real": 0.1 * jax.random.normal(ks[2], (Cout,), jnp.float32),
        "b_imag": 0.1 * jax.random.normal(ks[3], (Cout,), jnp.float32),
        "gamma": 1.0 + 0.1 * jax.random.normal(ks[4], (2 * Cout,), jnp.float32),
        "beta": 0.1 * jax.random.normal(ks[5], (2 * Cout,), jnp.float32),
        "alpha": jnp.float32(0.25),     # PReLU default init
    }

    # ---- Config A: f32, multi-tile grids (conv_tile_m=128 -> 4 conv tiles) --------
    N, H, W = 2, 16, 16
    x = jax.random.normal(ks[6], (N, 2 * Cin, H, W), jnp.float32)

    out_c = jax.block_until_ready(
        complex_wrapper_forward(x, params, conv_tile_m=128, **cfg))
    ref_c = jax.block_until_ready(_complex_tconv_reference(x, params, **cfg))
    assert out_c.shape == (N, 2 * Cout, 2 * H, 2 * W), out_c.shape
    err_c = float(jnp.max(jnp.abs(out_c - ref_c)))
    assert err_c < 1e-4, f"complex conv-transpose mismatch: {err_c}"

    out_d = jax.block_until_ready(decoder_block_forward(
        x, params, conv_tile_m=128, bn_tile_m=256, **cfg))
    ref_d = jax.block_until_ready(decoder_block_reference(x, params, **cfg))
    assert out_d.shape == ref_d.shape, (out_d.shape, ref_d.shape)
    err_d = float(jnp.max(jnp.abs(out_d - ref_d)))
    assert err_d < 5e-4, f"decoder block (f32) mismatch: {err_d}"

    # ---- Config B: ragged M (exercises the M-padding path) + bf16 slabs ----------
    Nb, Hb, Wb = 2, 16, 15
    xb = jax.random.normal(ks[7], (Nb, 2 * Cin, Hb, Wb), jnp.float32)
    out_b = jax.block_until_ready(decoder_block_forward(
        xb, params, slab_dtype=jnp.bfloat16, **cfg))
    ref_b = jax.block_until_ready(decoder_block_reference(xb, params, **cfg))
    assert out_b.shape == ref_b.shape, (out_b.shape, ref_b.shape)
    err_b = float(jnp.max(jnp.abs(out_b - ref_b)))
    assert err_b < 1e-1, f"decoder block (bf16) mismatch: {err_b}"

    print("KERNEL_OK")
</pallas_src>

<mosaic_0001>
module attributes {stable_mosaic.version = 11 : i64} {
  func.func @_conv_bias_kernel(%arg0: i32, %arg1: memref<32x32xf32, #tpu.memory_space<vmem>>, %arg2: memref<32x1xf32, #tpu.memory_space<vmem>>, %arg3: memref<32x128xf32, #tpu.memory_space<vmem>>, %arg4: memref<32x128xf32, #tpu.memory_space<vmem>>) attributes {dimension_semantics = [#tpu.dimension_semantics<parallel>], iteration_bounds = array<i64: 4>, scalar_prefetch = 0 : i64, scratch_operands = 0 : i64, tpu.core_type = #tpu.core_type<tc>, window_params = [{pipeline_mode = #tpu.pipeline_mode<synchronous>, transform_indices = @transform_0, window_bounds = array<i64: 32, 32>}, {pipeline_mode = #tpu.pipeline_mode<synchronous>, transform_indices = @transform_1, window_bounds = array<i64: 32, 1>}, {transform_indices = @transform_2, window_bounds = array<i64: 32, 128>}, {transform_indices = @transform_3, window_bounds = array<i64: 32, 128>}]} {
    %c0 = arith.constant 0 : index
    %c0_0 = arith.constant 0 : index
    %0 = vector.load %arg1[%c0, %c0_0] : memref<32x32xf32, #tpu.memory_space<vmem>>, vector<32x32xf32>
    %c0_1 = arith.constant 0 : index
    %c0_2 = arith.constant 0 : index
    %1 = vector.load %arg3[%c0_1, %c0_2] : memref<32x128xf32, #tpu.memory_space<vmem>>, vector<32x128xf32>
    %cst = arith.constant dense<0.000000e+00> : vector<32x128xf32>
    %2 = tpu.matmul %0, %1, %cst {dimension_numbers = #tpu.dot_dimension_numbers<[1], [0], [0], [1], [0, 0, 1, 1], [], []>} : vector<32x32xf32>, vector<32x128xf32>, vector<32x128xf32> -> vector<32x128xf32>
    %c0_3 = arith.constant 0 : index
    %c0_4 = arith.constant 0 : index
    %3 = vector.load %arg2[%c0_3, %c0_4] : memref<32x1xf32, #tpu.memory_space<vmem>>, vector<32x1xf32>
    %4 = vector.broadcast %3 : vector<32x1xf32> to vector<32x128xf32>
    %5 = arith.addf %2, %4 : vector<32x128xf32>
    %c0_5 = arith.constant 0 : index
    %c0_6 = arith.constant 0 : index
    %6 = vector.load %arg4[%c0_5, %c0_6] : memref<32x128xf32, #tpu.memory_space<vmem>>, vector<32x128xf32>
    tpu.vector_store %arg4[%c0_5, %c0_6], %5 {strides = array<i32>} : memref<32x128xf32, #tpu.memory_space<vmem>>, vector<32x128xf32>,
    return
  }
  func.func @transform_0(%arg0: i32) -> (i32, i32) {
    %c0_i32 = arith.constant 0 : i32
    %c0_i32_0 = arith.constant 0 : i32
    %c0_i32_1 = arith.constant 0 : i32
    return %c0_i32, %c0_i32_0 : i32, i32
  }
  func.func @transform_1(%arg0: i32) -> (i32, i32) {
    %c0_i32 = arith.constant 0 : i32
    %c0_i32_0 = arith.constant 0 : i32
    %c0_i32_1 = arith.constant 0 : i32
    return %c0_i32, %c0_i32_0 : i32, i32
  }
  func.func @transform_2(%arg0: i32) -> (i32, i32) {
    %c0_i32 = arith.constant 0 : i32
    %c0_i32_0 = arith.constant 0 : i32
    return %c0_i32, %arg0 : i32, i32
  }
  func.func @transform_3(%arg0: i32) -> (i32, i32) {
    %c0_i32 = arith.constant 0 : i32
    %c0_i32_0 = arith.constant 0 : i32
    return %c0_i32, %arg0 : i32, i32
  }
}

</mosaic_0001>

<bundles_post_ra>
// kernel: tpu_custom_call.1
= control target key start
LH: loop header
LB: loop body
LE: loop exit
PB: predicated region body
PF: predicated region fallthrough
CT: control target
= control target key end

     0   :  { %8 = vsyncpa [#allocation3], 0  ;;  %s834_s0 = inlined_call_operand.vmem [shape: f32[32,32], index: 0, kind: input, shape index: {}]   ;;  %s835_s1 = inlined_call_operand.vmem [shape: f32[32,1], index: 1, kind: input, shape index: {}]   ;;  %s836_s2 = inlined_call_operand.hbm [shape: f32[32,512], index: 2, kind: input, shape index: {}]   ;;  %s837_s3 = inlined_call_operand.hbm [shape: f32[32,512], index: 3, kind: output, shape index: {}]  }
   0x1   :  { %10 = vsyncpa [#allocation3 + $0x1], 0 }
   0x2   :  { %11 = vsyncpa [#allocation4], 0 }
   0x3   :  { %13 = vsyncpa [#allocation4 + $0x1], 0  ;;  %s640_s12 = smov 0   ;;  %s642_s13 = smov 0  }
   0x4   :  { %s644_s14 = smov 0   ;;  %s646_s15 = smov 0  }
   0x5 LB: > { %s661_s16 = sadd.s32 4294967295, %s609_s15   ;;  %s408_s17 = sadd.s32 4294967294, %s609_s15   ;;  %s609_s15 = sphi %s646_s15, %s850_s15   ;;  %s605_s14 = sphi %s644_s14, %s849_s14   ;;  %s601_s13 = sphi %s642_s13, %s848_s13   ;;  %s597_s12 = sphi %s640_s12, %s847_s12  }
   0x6   : > { %s665_s18 = sadd.s32 1, %s609_s15   ;;  %s68_s19 = sadd.s32 1, %s605_s14 }
   0x7   : > { %s65_s20 = ssub.s32 %s609_s15, %s665_s18  ;;  %p75_p0 = scmp.ne.s32.totalorder %s605_s14, %s601_s13 }
   0x8   : > { %p66_p1 = scmp.eq.s32.totalorder %s65_s20, 0  ;;  %p76_p2 = scmp.eq.s32.totalorder %s609_s15, 0 }
   0x9   : > { %p81_p3 = scmp.ne.s32.totalorder %s601_s13, %s597_s12  ;;  %p82_p4 = scmp.eq.s32.totalorder %s661_s16, 0 }
   0xa   : > { %s677_s21 = scalar_select %p66_p1, %s605_s14, %s68_s19  }
   0xb   : > { %p679_p5 = por %p76_p2, %p75_p0  ;;  %p683_p6 = por %p82_p4, %p81_p3 }
   0xc   : > { %p105_p7 = scmp.eq.s32.totalorder %s661_s16, 3  ;;  %p111_p8 = scmp.eq.s32.totalorder %s408_s17, 3 }
   0xd   : > { %p470_p9 = scmp.lt.s32.totalorder %s609_s15, 4  ;;  %s137_s26 = sand.u32 1, %s605_s14  }
   0xe   : > { %p689_p10 = por %p105_p7, %p75_p0  ;;  %p693_p11 = por %p111_p8, %p81_p3 }
   0xf   : > { %s412_s27 = sshll.u32 %s609_s15, 7  ;;  %s411_s28 = sshll.u32 %s137_s26, 5 }
  0x10   : > { %s841_s24 = scalar_select %p689_p10, 1, 0 }
  0x11   : > { %s842_s25 = scalar_select %p693_p11, 1, 0 }
  0x12   : > { %s702_s4 = scalar_lea.hbm %s836_s2, %s412_s27  ;;  %s141_s5 = scalar_lea.vmem [#allocation2], %s411_s28 }
  0x13   : > { %s147_s6 = sshll.u32 %s141_s5, 4  ;;  %p706_p12 = pnand %p470_p9, %p679_p5  ;;  %s710_s6 = int_to_ptr.vmem [resolvable:$true] %s147_s6 }
  0x14   : > { %s713_s8 = scalar_lea.sflag [#allocation3], %s137_s26  ;;  %s513_s9 = scalar_lea.hbm %s702_s4, 512 }
  0x15   : > { %p514_p0 = scmp.ne.s32.totalorder %s702_s4, %s513_s9  ;;  %p515_p1 = pneg %p706_p12 }
  0x16   : > { %s518_s17 = scalar_lea.hbm %s836_s2, 2048  ;;  %p519_p4 = scmp.lt.u32.totalorder %s702_s4, %s836_s2 }
  0x17   : > { %p516_p2 = pnand %p515_p1, %p514_p0  ;;  %p520_p5 = scmp.lt.u32.totalorder %s518_s17, %s513_s9 }
  0x18   : > { %p522_p8 = scmp.lt.u32.totalorder %s513_s9, %s702_s4 }
  0x19   : > { %p517_p3 = pneg %p516_p2  ;;  %p521_p7 = por %p520_p5, %p519_p4 }
  0x1b   : > { %p523_p9 = por %p522_p8, %p521_p7 }
  0x1d   : > { %p524_p13 = pnand %p523_p9, %p517_p3 }
  0x1f   : > { %527 = shalt.err (!%p524_p13)
}
  0x20   : > { %s528_s22 = scalar_lea.vmem %s710_s6, 512  ;;  %s611_s26 = smov [#allocation2]  }
  0x21   : > { %p529_p0 = scmp.ne.s32.totalorder %s710_s6, %s528_s22  ;;  %s533_s27 = sshll.u32 %s611_s26, 4  ;;  %s534_s27 = int_to_ptr.vmem [resolvable:$false] %s533_s27 }
  0x22   : > { %s535_s28 = scalar_lea.vmem %s534_s27, 1024  ;;  %p536_p10 = scmp.lt.s32.totalorder %s710_s6, %s534_s27 }
  0x23   : > { %p531_p2 = pnand %p529_p0, %p515_p1  ;;  %p537_p4 = scmp.lt.s32.totalorder %s535_s28, %s528_s22 }
  0x25   : > { %p532_p11 = pneg %p531_p2  ;;  %p538_p5 = por %p537_p4, %p536_p10 }
  0x27   : > { %p539_p7 = pnand %p538_p5, %p532_p11 }
  0x29   : > { %542 = shalt.err (!%p539_p7)
}
  0x2a   : > { %s612_s29 = smov 512   ;;  %s613_s30 = smov 128  }
  0x2b   : > { %s614_s5 = smov 8   ;;  %p155_p13 = scmp.lt.s32.totalorder %s609_s15, 5 }
  0x2c   : > { %465 = dma.hbm_to_vmem [thread:$0]  (!%p706_p12), %s702_s4, 512, %s710_s6, %s713_s8, %s612_s29, %s613_s30, %s614_s5  }
  0x2d   : > { %p844_p1 = scmp.ge.s32.totalorder %s609_s15, 1 }
  0x2f   : > { %p156_p3 = pnand %p844_p1, %p155_p13 }
  0x30   : > { %s745_s9 = sand.u32 (!%p156_p3), 1, %s601_s13  }
  0x31   : > { %159 = sbr.rel (%p156_p3) target bundleno = 300 (0x12c), region = 32  ;;  %s414_s10 = sshll.u32 (!%p156_p3), %s745_s9, 5 }
  0x32   : > { %s162_s11 = scalar_lea.sflag (!%p156_p3), [#allocation3], %s745_s9  ;;  %s165_s17 = scalar_lea.vmem (!%p156_p3), [#allocation2], %s414_s10 }
  0x38   : > { %588 = dma.done.wait (%p683_p6), %s162_s11, 512  }
  0x39   : > { %590 = vsyncadd (%p683_p6), %s162_s11, 4294966784  ;;  %v615_v0 = vmov 0   ;;  %vm220_vm0 = vcmask 261120   ;;  %v192_v1 = vld [vmem:[%s165_s17] sm:$0xff]  ;;  %v193_v2 = vld [vmem:[%s165_s17 + $0x8] sm:$0xff]  ;;  %s187_s4 = scalar_lea.vmem [#allocation5], %s414_s10 }
  0x3a   : > { %512 = vset.pattern.permute.xlu1 %v615_v0  ;;  %511 = vset.pattern.permute.xlu0 %v615_v0  ;;  %v194_v3 = vld [vmem:[%s165_s17 + $0x10] sm:$0xff]  ;;  %v446_v4 = vpack.c.bf16 %v193_v2, %v192_v1  ;;  %v195_v5 = vld [vmem:[%s165_s17 + $0x18] sm:$0xff]  ;;  %v188_v6 = vld [vmem:[%s834_s0] sm:$0xff]  ;;  %s335_s6 = sshll.u32 %s187_s4, 4  ;;  %s421_s7 = sshll.u32 %s661_s16, 7  ;;  %s786_s6 = int_to_ptr.vmem [resolvable:$true] %s335_s6 }
  0x3b   : > { %v190_v7 = vld [vmem:[%s834_s0 + $0x10] sm:$0xff]  ;;  %v450_v8 = vpack.c.bf16 %v195_v5, %v194_v3  ;;  %440 = vmatprep.mubr.msk.f32.mxu0 %vm220_vm0, %v188_v6  ;;  %v196_v10 = vld [vmem:[%s835_s1] sm:$0xff]  ;;  %v199_v11 = vld [vmem:[%s835_s1 + $0x18] sm:$0xff]  ;;  %s791_s10 = scalar_lea.hbm %s837_s3, %s421_s7  ;;  %s323_s16 = scalar_lea.sflag [#allocation4], %s745_s9 }
  0x3c   : > { %443 = vmatprep.mubr.msk.f32.mxu1 %vm220_vm0, %v190_v7  ;;  %447 = vmatprep.subr.bf16.mxu0 %v446_v4  ;;  %v198_v9 = vld [vmem:[%s835_s1 + $0x10] sm:$0xff]  ;;  %v197_v12 = vld [vmem:[%s835_s1 + $0x8] sm:$0xff]  ;;  %v191_v14 = vld [vmem:[%s834_s0 + $0x18] sm:$0xff]  ;;  %s543_s19 = scalar_lea.vmem %s786_s6, 512  ;;  %p845_p10 = scmp.ne.s32.totalorder %s841_s24, 0 }
  0x3d   : > { %454 = vmatprep.subr.bf16.mxu1 %v446_v4  ;;  %449 = vmatpush3.bf16.msra.mxu0 %v446_v4  ;;  %v189_v13 = vld [vmem:[%s834_s0 + $0x8] sm:$0xff]  ;;  %p544_p6 = scmp.ne.s32.totalorder %s786_s6, %s543_s19  ;;  %s616_s20 = smov [#allocation5]  }
  0x3e   : > { %456 = vmatpush3.bf16.msra.mxu1 %v446_v4  ;;  %451 = vmatprep.subr.bf16.mxu0 %v450_v8  ;;  %s547_s22 = sshll.u32 %s616_s20, 4  ;;  %s548_s22 = int_to_ptr.vmem [resolvable:$false] %s547_s22 }
  0x3f   : > { %455 = vmatprep.subr.bf16.mxu1 %v450_v8  ;;  %212 = vperm.xlu1 %512, %v198_v9   ;;  %p545_p11 = pnand %p544_p6, %p845_p10  ;;  %s549_s26 = scalar_lea.vmem %s548_s22, 1024 }
  0x40   : > { %202 = vperm.xlu0 %511, %v196_v10   ;;  %p550_p8 = scmp.lt.s32.totalorder %s786_s6, %s548_s22  ;;  %p551_p9 = scmp.lt.s32.totalorder %s549_s26, %s543_s19 }
  0x41   : > { %453 = vmatpush3.bf16.msra.mxu0 %v450_v8  ;;  %p546_p12 = pneg %p545_p11 }
  0x42   : > { %457 = vmatpush3.bf16.msra.mxu1 %v450_v8  ;;  %p552_p0 = por %p551_p9, %p550_p8 }
  0x43   : > { %217 = vperm.xlu1 %512, %v199_v11  }
  0x44   : > { %207 = vperm.xlu0 %511, %v197_v12   ;;  %441 = vmatmul.mubr.msk.f32.vlgmr.msra.gmra.mrb[0].mxu0 %vm220_vm0, %v189_v13  ;;  %p553_p2 = pnand %p552_p0, %p546_p12 }
  0x45   : > { %444 = vmatmul.mubr.msk.f32.vlgmr.msra.gmra.mrb[0].mxu1 %vm220_vm0, %v191_v14 }
  0xbe   : > { %v213_v15 = vpop.permute.xlu1 %212 }
  0xbf   : > { %v203_v16 = vpop.permute.xlu0 %202 }
  0xc2   : > { %v218_v17 = vpop.permute.xlu1 %217 }
  0xc3   : > { %v208_v18 = vpop.permute.xlu0 %207 }
 0x117   : > { %v442_v19 = vpop.f32.mrb[0].mxu0 }
 0x118   : > { %v445_v20 = vpop.f32.mrb[0].mxu1  ;;  %v305_v21 = vadd.f32 %v442_v19, %v208_v18  ;;  %v299_v23 = vpop.f32.mrb[1].mxu0 }
 0x119   : > { %v315_v22 = vadd.f32 %v445_v20, %v218_v17  ;;  %v309_v24 = vpop.f32.mrb[1].mxu1  ;;  %v300_v25 = vadd.f32 %v299_v23, %v203_v16 }
 0x11a   : > { %v310_v26 = vadd.f32 %v309_v24, %v213_v15  ;;  %319 = vst [vmem:[%s187_s4 + $0x8] sm:$0xff] %v305_v21 }
 0x11b   : > { %321 = vst [vmem:[%s187_s4 + $0x18] sm:$0xff] %v315_v22  ;;  %318 = vst [vmem:[%s187_s4] sm:$0xff] %v300_v25 }
 0x11c   : > { %320 = vst [vmem:[%s187_s4 + $0x10] sm:$0xff] %v310_v26 }
 0x11d   : > { %556 = shalt.err (!%p553_p2)
}
 0x11e   : > { %s557_s27 = scalar_lea.hbm %s791_s10, 512  ;;  %s561_s30 = scalar_lea.hbm %s837_s3, 2048 }
 0x11f   : > { %p558_p4 = scmp.ne.s32.totalorder %s791_s10, %s557_s27  ;;  %p562_p13 = scmp.lt.u32.totalorder %s791_s10, %s837_s3 }
 0x120   : > { %p563_p1 = scmp.lt.u32.totalorder %s561_s30, %s557_s27  ;;  %p565_p6 = scmp.lt.u32.totalorder %s557_s27, %s791_s10 }
 0x121   : > { %p559_p5 = pnand %p558_p4, %p845_p10 }
 0x122   : > { %p564_p3 = por %p563_p1, %p562_p13 }
 0x123   : > { %p560_p7 = pneg %p559_p5 }
 0x124   : > { %p566_p11 = por %p565_p6, %p564_p3 }
 0x126   : > { %p567_p12 = pnand %p566_p11, %p560_p7 }
 0x128   : > { %570 = shalt.err (!%p567_p12)
}
 0x129   : > { %s617_s17 = smov 128   ;;  %s618_s4 = smov 512  }
 0x12a   : > { %s619_s7 = smov 8  }
 0x12b   : > { %460 = dma.vmem_to_hbm [thread:$0]  (%p845_p10), %s786_s6, 512, %s791_s10, %s323_s16, %s617_s17, %s618_s4, %s619_s7  }
 0x12c PF: > { %p471_p8 = scmp.ge.s32.totalorder %s609_s15, 2  ;;  %s350_s8 = sand.u32 1, %s597_s12  }
 0x12d   : > { %p846_p9 = scmp.ne.s32.totalorder %s842_s25, 0  ;;  %s351_s23 = scalar_lea.sflag [#allocation4], %s350_s8 }
 0x12f   : > { %p467_p0 = pnand %p471_p8, %p846_p9 }
 0x131   : > { %592 = dma.done.wait (!%p467_p0), %s351_s23, 512  }
 0x132   : > { %594 = vsyncadd (!%p467_p0), %s351_s23, 4294966784  ;;  %p16_p2 = scmp.ge.s32.totalorder %s665_s18, 6   ;;  %s847_s12 = smov %s601_s13 }
 0x133   : > { %s848_s13 = smov %s605_s14  ;;  %s849_s14 = smov %s677_s21 }
 0x134   : > { %s850_s15 = smov %s665_s18  ;;  %18 = sbr.rel (!%p16_p2) target bundleno = 5 (0x5), region = 77 }
 0x13b   :  { %356 = vsyncpa [#allocation3], 1 }
 0x13c   :  { %358 = vsyncpa [#allocation3 + $0x1], 1 }
 0x13d   :  { %359 = vsyncpa [#allocation4], 1 }
 0x13e   :  { %361 = vsyncpa [#allocation4 + $0x1], 1 }

</bundles_post_ra>
